<compile_context>
chip_gen: v6e
topology: v6e:2x2x1
jax: 0.10.0
libtpu: 0.0.40
codegen_flags: <defaults>
</compile_context>

<pallas_src>
import functools

import jax
import jax.numpy as jnp
from jax.experimental import pallas as pl
from jax.experimental.pallas import tpu as pltpu


def _round_up(x, m):
    return (x + m - 1) // m * m


def _cdiv(a, b):
    return -(-a // b)


def _pick_cout_tile(cout, max_tile=256):
    # <= max_tile: single full-dim block. Otherwise 256 rows (multiple of 8,
    # fills the 256-wide v6e/v7x MXU); a ragged last Cout block is masked by
    # Pallas, so no divisibility requirement and no huge-fallback VMEM blowup.
    return cout if cout <= max_tile else max_tile


def _pick_lane_tile(m, tl_max=1024):
    # Lane tile: a multiple of 128 (or the full dim when m <= 128), splitting m
    # as evenly as possible into <= tl_max wide tiles to minimize ragged waste.
    if m <= 128:
        return m
    nblocks = _cdiv(m, tl_max)
    return min(_round_up(_cdiv(m, nblocks), 128), _round_up(m, 128))


def _shortcut_kernel(x_ref, w_ref, b_ref, o_ref):
    # x_ref: (Cin, TL)    bf16 activations (channels = sublanes, spatial(+batch) = lanes)
    # w_ref: (TCout, Cin) bf16 1x1 conv weight with BN scale folded in
    # b_ref: (TCout, 1)   f32 folded BN bias
    # o_ref: (TCout, TL)  lane-dense output tile
    acc = jnp.dot(w_ref[...], x_ref[...], preferred_element_type=jnp.float32)
    o_ref[...] = (acc + b_ref[...]).astype(o_ref.dtype)


def make_shortcut_params(key, in_channels, out_channels, stride, eps=1e-5):
    """Mirrors ShortCut.__init__: projection branch only if stride!=1 or Cin!=Cout."""
    if stride == 1 and in_channels == out_channels:
        return None
    k_w, k_g, k_b, k_m, k_v = jax.random.split(key, 5)
    w = jax.random.normal(k_w, (out_channels, in_channels, 1, 1), jnp.float32) * 0.1
    gamma = 1.0 + 0.1 * jax.random.normal(k_g, (out_channels,), jnp.float32)
    beta = 0.1 * jax.random.normal(k_b, (out_channels,), jnp.float32)
    running_mean = 0.1 * jax.random.normal(k_m, (out_channels,), jnp.float32)
    running_var = jnp.abs(jax.random.normal(k_v, (out_channels,), jnp.float32)) + 0.5
    return dict(w=w, gamma=gamma, beta=beta, mean=running_mean, var=running_var,
                eps=eps, stride=stride)


@functools.partial(jax.jit, static_argnames=("stride",))
def _shortcut_conv_bn(x, w, gamma, beta, mean, var, eps, stride):
    N, Cin, H, W = x.shape
    Cout = w.shape[0]

    # stride-s 1x1 conv == per-pixel channel matmul at strided spatial locations.
    x_s = x[:, :, ::stride, ::stride]                    # (N, Cin, Ho, Wo)
    Ho, Wo = x_s.shape[2], x_s.shape[3]
    L = Ho * Wo

    # Fold BN (inference mode) into a bf16 weight scale + f32 per-channel bias.
    scale = gamma / jnp.sqrt(var + eps)                  # (Cout,)
    w_mat = (w.reshape(Cout, Cin) * scale[:, None]).astype(jnp.bfloat16)
    bias = (beta - mean * scale).reshape(Cout, 1).astype(jnp.float32)

    TCout = _pick_cout_tile(Cout)
    grid_c = _cdiv(Cout, TCout)

    # Advisory cost (post-reorder traffic: weight counted once, bf16 inputs).
    flops = 2 * N * L * Cin * Cout
    bytes_accessed = (N * Cin * L * 2 + Cout * Cin * 2 + Cout * 4
                      + N * Cout * L * x.dtype.itemsize)
    cost = pl.CostEstimate(flops=flops, transcendentals=0,
                           bytes_accessed=bytes_accessed)
    # TODO(synk): pipeline_mode=pl.Buffered(1) on the grid-invariant weight/bias
    # blocks would halve their VMEM footprint (useful for v7x's 64 MiB VMEM).
    cparams = dict(vmem_limit_bytes=32 * 1024 * 1024)

    fold_batch = L < 256   # late-stage shortcuts: fold N into the lane axis

    if fold_batch:
        M = N * L
        TL = _pick_lane_tile(M)
        xs = (jnp.transpose(x_s.reshape(N, Cin, L), (1, 0, 2))
              .reshape(Cin, M).astype(jnp.bfloat16))     # (Cin, N*L), small
        out = pl.pallas_call(
            _shortcut_kernel,
            out_shape=jax.ShapeDtypeStruct((Cout, M), x.dtype),
            grid_spec=pltpu.PrefetchScalarGridSpec(
                num_scalar_prefetch=0,
                grid=(grid_c, _cdiv(M, TL)),             # Cout tiles outermost
                in_specs=[
                    pl.BlockSpec((Cin, TL), lambda c, l: (0, l)),
                    pl.BlockSpec((TCout, Cin), lambda c, l: (c, 0)),
                    pl.BlockSpec((TCout, 1), lambda c, l: (c, 0)),
                ],
                out_specs=pl.BlockSpec((TCout, TL), lambda c, l: (c, l)),
            ),
            compiler_params=pltpu.CompilerParams(
                dimension_semantics=("parallel", "parallel"), **cparams),
            cost_estimate=cost,
        )(xs, w_mat, bias)
        return jnp.transpose(out.reshape(Cout, N, Ho, Wo), (1, 0, 2, 3))

    # Large-spatial shortcuts: NCHW-native (no transposes), per-image grid with
    # the Cout-tile axis outermost so the weight stays VMEM-resident across N, L.
    TL = _pick_lane_tile(L)
    xs = x_s.reshape(N, Cin, L).astype(jnp.bfloat16)
    out = pl.pallas_call(
        _shortcut_kernel,
        out_shape=jax.ShapeDtypeStruct((N, Cout, L), x.dtype),
        grid_spec=pltpu.PrefetchScalarGridSpec(
            num_scalar_prefetch=0,
            grid=(grid_c, N, _cdiv(L, TL)),              # Cout tiles outermost
            in_specs=[
                pl.BlockSpec((None, Cin, TL), lambda c, n, l: (n, 0, l)),
                pl.BlockSpec((TCout, Cin), lambda c, n, l: (c, 0)),
                pl.BlockSpec((TCout, 1), lambda c, n, l: (c, 0)),
            ],
            out_specs=pl.BlockSpec((None, TCout, TL), lambda c, n, l: (n, c, l)),
        ),
        compiler_params=pltpu.CompilerParams(
            dimension_semantics=("parallel", "parallel", "parallel"), **cparams),
        cost_estimate=cost,
    )(xs, w_mat, bias)
    return out.reshape(N, Cout, Ho, Wo)


def shortcut_forward(x, params):
    """ShortCut.forward: identity if no projection branch, else conv1x1+BN."""
    if params is None:
        return x
    return _shortcut_conv_bn(x, params["w"], params["gamma"], params["beta"],
                             params["mean"], params["var"], params["eps"],
                             stride=params["stride"])


def _reference(x, params):
    if params is None:
        return x
    w, gamma, beta, mean, var, eps, stride = (
        params["w"], params["gamma"], params["beta"], params["mean"],
        params["var"], params["eps"], params["stride"])
    Cout, Cin = w.shape[0], w.shape[1]
    x_s = x[:, :, ::stride, ::stride]
    conv = jnp.einsum("nchw,oc->nohw", x_s, w.reshape(Cout, Cin))
    scale = (gamma / jnp.sqrt(var + eps)).reshape(1, Cout, 1, 1)
    bias = (beta - mean * gamma / jnp.sqrt(var + eps)).reshape(1, Cout, 1, 1)
    return conv * scale + bias


if __name__ == "__main__":
    key = jax.random.PRNGKey(0)
    k_x, k_p = jax.random.split(key)

    N, Cin, H, W = 2, 4, 16, 16
    Cout, stride = 8, 2
    x = jax.random.normal(k_x, (N, Cin, H, W), jnp.float32)

    # Projection path: stride 2, channel expansion (small L -> batch-folded path).
    params = make_shortcut_params(k_p, Cin, Cout, stride)
    y = jax.block_until_ready(shortcut_forward(x, params))
    y_ref = _reference(x, params)
    assert y.shape == (N, Cout, H // stride, W // stride), y.shape
    assert jnp.allclose(y, y_ref, atol=2e-2, rtol=2e-2)  # bf16 MXU, f32 accumulate

    # Projection path: stride 1 but Cin != Cout (L=256 -> NCHW-native path).
    params_s1 = make_shortcut_params(k_p, Cin, Cout, 1)
    y_s1 = jax.block_until_ready(shortcut_forward(x, params_s1))
    assert jnp.allclose(y_s1, _reference(x, params_s1), atol=2e-2, rtol=2e-2)

    # Identity path (stride=1, Cin==Cout) -> no conv branch at all.
    params_id = make_shortcut_params(k_p, Cin, Cin, 1)
    y_id = jax.block_until_ready(shortcut_forward(x, params_id))
    assert jnp.array_equal(y_id, x)

    print("KERNEL_OK")
</pallas_src>

<mosaic_0001>
module attributes {stable_mosaic.version = 11 : i64} {
  func.func @_shortcut_kernel(%arg0: i32, %arg1: i32, %arg2: memref<4x128xbf16, #tpu.memory_space<vmem>>, %arg3: memref<8x4xbf16, #tpu.memory_space<vmem>>, %arg4: memref<8x1xf32, #tpu.memory_space<vmem>>, %arg5: memref<8x128xf32, #tpu.memory_space<vmem>>) attributes {dimension_semantics = [#tpu.dimension_semantics<parallel>, #tpu.dimension_semantics<parallel>], iteration_bounds = array<i64: 1, 1>, scalar_prefetch = 0 : i64, scratch_operands = 0 : i64, tpu.core_type = #tpu.core_type<tc>, window_params = [{transform_indices = @transform_0, window_bounds = array<i64: 4, 128>}, {transform_indices = @transform_1, window_bounds = array<i64: 8, 4>}, {transform_indices = @transform_2, window_bounds = array<i64: 8, 1>}, {transform_indices = @transform_3, window_bounds = array<i64: 8, 128>}]} {
    %c0 = arith.constant 0 : index
    %c0_0 = arith.constant 0 : index
    %0 = vector.load %arg3[%c0, %c0_0] : memref<8x4xbf16, #tpu.memory_space<vmem>>, vector<8x4xbf16>
    %c0_1 = arith.constant 0 : index
    %c0_2 = arith.constant 0 : index
    %1 = vector.load %arg2[%c0_1, %c0_2] : memref<4x128xbf16, #tpu.memory_space<vmem>>, vector<4x128xbf16>
    %cst = arith.constant dense<0.000000e+00> : vector<8x128xf32>
    %2 = tpu.matmul %0, %1, %cst {dimension_numbers = #tpu.dot_dimension_numbers<[1], [0], [0], [1], [0, 0, 1, 1], [], []>} : vector<8x4xbf16>, vector<4x128xbf16>, vector<8x128xf32> -> vector<8x128xf32>
    %c0_3 = arith.constant 0 : index
    %c0_4 = arith.constant 0 : index
    %3 = vector.load %arg4[%c0_3, %c0_4] : memref<8x1xf32, #tpu.memory_space<vmem>>, vector<8x1xf32>
    %4 = vector.broadcast %3 : vector<8x1xf32> to vector<8x128xf32>
    %5 = arith.addf %2, %4 : vector<8x128xf32>
    %c0_5 = arith.constant 0 : index
    %c0_6 = arith.constant 0 : index
    %6 = vector.load %arg5[%c0_5, %c0_6] : memref<8x128xf32, #tpu.memory_space<vmem>>, vector<8x128xf32>
    tpu.vector_store %arg5[%c0_5, %c0_6], %5 {strides = array<i32>} : memref<8x128xf32, #tpu.memory_space<vmem>>, vector<8x128xf32>,
    return
  }
  func.func @transform_0(%arg0: i32, %arg1: i32) -> (i32, i32) {
    %c0_i32 = arith.constant 0 : i32
    %c0_i32_0 = arith.constant 0 : i32
    return %c0_i32, %arg1 : i32, i32
  }
  func.func @transform_1(%arg0: i32, %arg1: i32) -> (i32, i32) {
    %c0_i32 = arith.constant 0 : i32
    %c0_i32_0 = arith.constant 0 : i32
    return %arg0, %c0_i32 : i32, i32
  }
  func.func @transform_2(%arg0: i32, %arg1: i32) -> (i32, i32) {
    %c0_i32 = arith.constant 0 : i32
    %c0_i32_0 = arith.constant 0 : i32
    return %arg0, %c0_i32 : i32, i32
  }
  func.func @transform_3(%arg0: i32, %arg1: i32) -> (i32, i32) {
    %c0_i32 = arith.constant 0 : i32
    return %arg0, %arg1 : i32, i32
  }
}

</mosaic_0001>

<bundles_post_ra>
// kernel: _shortcut_conv_bn.1
= control target key start
LH: loop header
LB: loop body
LE: loop exit
PB: predicated region body
PF: predicated region fallthrough
CT: control target
= control target key end

     0   :  { %vm27_vm0 = vcmask 1041408   ;;  %v89_v0 = vmov 0.0   ;;  %vm90_vm1 = vmmov 0   ;;  %v91_v4 = vmov 0   ;;  %s124_s0 = inlined_call_operand.vmem [shape: bf16[4,128], index: 0, kind: input, shape index: {}]   ;;  %s125_s1 = inlined_call_operand.vmem [shape: bf16[8,4], index: 1, kind: input, shape index: {}]   ;;  %s126_s2 = inlined_call_operand.vmem [shape: f32[8,1], index: 2, kind: input, shape index: {}]   ;;  %s127_s3 = inlined_call_operand.vmem [shape: f32[8,128], index: 3, kind: output, shape index: {}]  }
   0x1   :  { %79 = vmatprep.subr.bf16.mxu0 %v89_v0  ;;  %v16_v1 = vld [vmem:[%s124_s0] sm:$0x3]  ;;  %81 = vmatprep.mubr.msk.bf16.mxu0 %vm90_vm1, %v89_v0  ;;  %vm23_vm2 = vcmask 31744  }
   0x2   :  { %v17_v2 = vld [vmem:[%s126_s2] sm:$0xff]  ;;  %v29_v3 = vsel %vm27_vm0, %v16_v1, 0  ;;  %88 = vset.pattern.permute.xlu0 %v91_v4 }
   0x3   :  { %80 = vmatpush3.bf16.msra.mxu0 %v29_v3  ;;  %v15_v5 = vld [vmem:[%s125_s1] sm:$0xf]  ;;  %20 = vperm.xlu0 %88, %v17_v2  }
   0x6   :  { %82 = vmatmul.mubr.msk.bf16.vlgmr.msra.gmra.mxu0 %vm23_vm2, %v15_v5 }
  0x7e   :  { %v21_v6 = vpop.permute.xlu0 %20 }
  0xc6   :  { %v65_v7 = vpop.f32.mrf.mxu0 }
  0xc7   :  { %v66_v8 = vadd.f32 %v65_v7, %v21_v6 }
  0xc8   :  { %v83_v9 = vpop.f32.mrf.mxu0 }
  0xc9   :  { %71 = vst [vmem:[%s127_s3] sm:$0xff] %v66_v8 }
  0xca   :  { %v68_v10 = vpop.f32.mrf.mxu0 }
  0xcc   :  { %v84_v11 = vpop.f32.mrf.mxu0 }

</bundles_post_ra>
